<compile_context>
chip_gen: v7x
topology: tpu7x:2x2x1
jax: 0.10.0
libtpu: 0.0.40
codegen_flags: <defaults>
</compile_context>

<pallas_src>
from functools import partial

import jax
import jax.numpy as jnp
from jax.experimental import pallas as pl
from jax.experimental.pallas import tpu as pltpu


# ------------------------------ small helpers -------------------------------

def _round_up(v, m):
    return ((v + m - 1) // m) * m


# ------------------------------ Pallas kernels ------------------------------

def _fused_graphnn_kernel(a_ref, x0_ref, wl_ref, wr_ref, b_ref, o_ref, x_buf):
    """One grid step == one SAGE layer; activations live in VMEM scratch.

    a_ref : (N, N)   normalized mean-aggregation matrix (resident)
    x0_ref: (N, F)   layer-0 input (resident, read only at layer 0)
    wl_ref: (F, F)   W_l of this layer (padded, lane-dense)
    wr_ref: (F, F)   W_r of this layer
    b_ref : (1, F)   bias of this layer
    x_buf : (N, F)   current activations (persist across grid steps)
    """
    layer = pl.program_id(0)
    last = pl.num_programs(0) - 1

    @pl.when(layer == 0)
    def _():
        x_buf[...] = x0_ref[...]

    x = x_buf[...]
    agg = jnp.dot(a_ref[...], x, preferred_element_type=jnp.float32)
    out = (jnp.dot(agg, wl_ref[...], preferred_element_type=jnp.float32)
           + jnp.dot(x, wr_ref[...], preferred_element_type=jnp.float32)
           + b_ref[...])

    # Next layer consumes ReLU(out); the network output is the raw
    # pre-activation of the LAST layer.
    @pl.when(layer != last)
    def _():
        x_buf[...] = jnp.maximum(out, 0.0)

    @pl.when(layer == last)
    def _():
        o_ref[...] = out.astype(o_ref.dtype)


def _sage_layer_tiled_kernel(a_ref, xk_ref, xi_ref, wl_ref, wr_ref, b_ref,
                             o_ref, acc_ref, *, apply_relu):
    """Tiled A@X with f32 accumulator; projection fused into the last k step."""
    k = pl.program_id(1)

    @pl.when(k == 0)
    def _():
        acc_ref[...] = jnp.zeros_like(acc_ref)

    acc_ref[...] += jnp.dot(a_ref[...].astype(jnp.float32), xk_ref[...],
                            preferred_element_type=jnp.float32)

    @pl.when(k == pl.num_programs(1) - 1)
    def _():
        out = (jnp.dot(acc_ref[...], wl_ref[...],
                       preferred_element_type=jnp.float32)
               + jnp.dot(xi_ref[...], wr_ref[...],
                         preferred_element_type=jnp.float32)
               + b_ref[...])
        if apply_relu:
            out = jnp.maximum(out, 0.0)
        o_ref[...] = out.astype(o_ref.dtype)


# ------------------------------ kernel wrappers ------------------------------

def _fused_forward(a_pad, x_pad, wl_stack, wr_stack, b_stack,
                   n_pad, f_pad, vmem_limit):
    n_layers = wl_stack.shape[0]
    return pl.pallas_call(
        _fused_graphnn_kernel,
        out_shape=jax.ShapeDtypeStruct((n_pad, f_pad), jnp.float32),
        grid_spec=pltpu.PrefetchScalarGridSpec(
            num_scalar_prefetch=0,
            grid=(n_layers,),
            in_specs=[
                pl.BlockSpec((n_pad, n_pad), lambda l: (0, 0)),          # A (resident)
                pl.BlockSpec((n_pad, f_pad), lambda l: (0, 0)),          # X0 (resident)
                pl.BlockSpec((None, f_pad, f_pad), lambda l: (l, 0, 0)),  # W_l layer l
                pl.BlockSpec((None, f_pad, f_pad), lambda l: (l, 0, 0)),  # W_r layer l
                pl.BlockSpec((None, 1, f_pad), lambda l: (l, 0, 0)),      # b layer l
            ],
            out_specs=pl.BlockSpec((n_pad, f_pad), lambda l: (0, 0)),
            scratch_shapes=[
                pltpu.VMEM((n_pad, f_pad), jnp.float32),     # resident activations
            ],
        ),
        compiler_params=pltpu.CompilerParams(
            dimension_semantics=("arbitrary",),
            vmem_limit_bytes=vmem_limit,
        ),
    )(a_pad, x_pad, wl_stack, wr_stack, b_stack)


def _sage_layer_tiled(a_pad, x, w_l, w_r, b, *, apply_relu, tm):
    n_pad = a_pad.shape[0]
    f_in_pad = x.shape[1]
    f_out_pad = w_l.shape[1]
    tk = tm
    grid = (n_pad // tm, n_pad // tk)

    a_bytes = a_pad.dtype.itemsize
    est = (2 * tm * tk * a_bytes                       # A tiles (double buffered)
           + 2 * tk * f_in_pad * 4                     # X (reduction rows)
           + 2 * tm * f_in_pad * 4                     # X (root rows)
           + 2 * 2 * f_in_pad * f_out_pad * 4          # W_l + W_r
           + 2 * f_out_pad * 4                         # bias
           + 2 * tm * f_out_pad * 4                    # out tiles
           + tm * f_in_pad * 4)                        # f32 accumulator scratch
    vmem_limit = int(min(max(est * 2, 32 * 1024 * 1024), 48 * 1024 * 1024))

    kernel = partial(_sage_layer_tiled_kernel, apply_relu=apply_relu)
    return pl.pallas_call(
        kernel,
        out_shape=jax.ShapeDtypeStruct((n_pad, f_out_pad), jnp.float32),
        grid_spec=pltpu.PrefetchScalarGridSpec(
            num_scalar_prefetch=0,
            grid=grid,
            in_specs=[
                pl.BlockSpec((tm, tk), lambda i, k: (i, k)),              # A tile (bf16)
                pl.BlockSpec((tk, f_in_pad), lambda i, k: (k, 0)),        # X (reduction)
                pl.BlockSpec((tm, f_in_pad), lambda i, k: (i, 0)),        # X (root)
                pl.BlockSpec((f_in_pad, f_out_pad), lambda i, k: (0, 0)),  # W_l
                pl.BlockSpec((f_in_pad, f_out_pad), lambda i, k: (0, 0)),  # W_r
                pl.BlockSpec((1, f_out_pad), lambda i, k: (0, 0)),        # bias
            ],
            out_specs=pl.BlockSpec((tm, f_out_pad), lambda i, k: (i, 0)),
            scratch_shapes=[
                pltpu.VMEM((tm, f_in_pad), jnp.float32),     # accumulator
            ],
        ),
        compiler_params=pltpu.CompilerParams(
            dimension_semantics=("parallel", "arbitrary"),
            vmem_limit_bytes=vmem_limit,
        ),
    )(a_pad, x, x, w_l, w_r, b)


# ----------------------- graph preprocessing (JAX glue) ----------------------

def build_aggregation_matrix(edge_index, edge_weight, num_nodes):
    """Dense (dst, src) matrix reproducing ConvLayer's message + 'mean' aggr.

    out[i] = (1/in_count[i]) * sum_{e: col[e]==i} dinv[row[e]]*w[e]*dinv[col[e]] * x[row[e]]
    """
    row, col = edge_index[0], edge_index[1]
    ew = edge_weight.astype(jnp.float32)

    deg = jax.ops.segment_sum(ew, col, num_segments=num_nodes)
    deg_inv_sqrt = jnp.where(deg > 0.0, deg ** -0.5, 0.0)
    w_norm = deg_inv_sqrt[row] * ew * deg_inv_sqrt[col]

    count = jax.ops.segment_sum(jnp.ones_like(ew), col, num_segments=num_nodes)
    inv_count = jnp.where(count > 0.0, 1.0 / count, 0.0)

    a_mat = jnp.zeros((num_nodes, num_nodes), jnp.float32).at[col, row].add(w_norm)
    return a_mat * inv_count[:, None]


def _fold_normalizer_into_layer0(params, mean, std):
    """Exact affine fold of (x-mean)/std into layer-0 weights.

    Layer 0 then consumes x_aug = [x, 1]; the extra weight row carries the
    -mean/std shift, so (A @ x_aug) @ W_aug == (A @ x_norm) @ W exactly.
    """
    s = jnp.where(std == 0.0, 1.0, std).astype(jnp.float32)
    m_over_s = mean.astype(jnp.float32) / s

    def fold(w):
        w = w.astype(jnp.float32)
        top = w / s[:, None]
        bot = -(m_over_s @ w)[None, :]
        return jnp.concatenate([top, bot], axis=0)      # (f_in + 1, f_out)

    p0 = dict(params[0])
    p0["w_l"] = fold(params[0]["w_l"])
    p0["w_r"] = fold(params[0]["w_r"])
    return [p0] + [dict(p) for p in params[1:]]


def _pad_weights(p, f_in_pad, f_out_pad):
    """Zero-pad W_l / W_r / bias to lane-dense padded shapes."""
    f_in, f_out = p["w_l"].shape
    wl = jnp.zeros((f_in_pad, f_out_pad), jnp.float32).at[:f_in, :f_out].set(
        p["w_l"].astype(jnp.float32))
    wr = jnp.zeros((f_in_pad, f_out_pad), jnp.float32).at[:f_in, :f_out].set(
        p["w_r"].astype(jnp.float32))
    b = jnp.zeros((1, f_out_pad), jnp.float32).at[0, :f_out].set(
        p["b_l"].astype(jnp.float32))
    return wl, wr, b


# --------------------------------- GraphNN ----------------------------------

def glorot_uniform(key, fan_in, fan_out):
    limit = (6.0 / (fan_in + fan_out)) ** 0.5
    return jax.random.uniform(key, (fan_in, fan_out), jnp.float32, -limit, limit)


def init_graphnn_params(key, neurons_per_layer):
    params = []
    for i in range(len(neurons_per_layer) - 1):
        f_in, f_out = neurons_per_layer[i], neurons_per_layer[i + 1]
        key, k1, k2 = jax.random.split(key, 3)
        params.append({
            "w_l": glorot_uniform(k1, f_in, f_out),   # lin_l weight, stored (in, out)
            "b_l": jnp.zeros((f_out,), jnp.float32),  # lin_l bias
            "w_r": glorot_uniform(k2, f_in, f_out),   # lin_r weight, no bias
        })
    return params


def graphnn_forward(params, x, edge_index, edge_weight, mean, std,
                    *, force_tiled=False, tm=512,
                    fused_vmem_budget_bytes=20 * 1024 * 1024):
    num_nodes = x.shape[0]
    n_layers = len(params)
    f_out_last = params[-1]["w_l"].shape[1]

    # DataNormalizer folded into layer-0 weights (exact, no extra kernel).
    params = _fold_normalizer_into_layer0(params, mean, std)
    x = jnp.concatenate(
        [x.astype(jnp.float32), jnp.ones((num_nodes, 1), jnp.float32)], axis=1)

    # TODO(synk): block-sparse A tiles + scalar-prefetch index_map (skip empty
    #             tiles) for large sparse graphs; dense A is the scaling limit.
    a_mat = build_aggregation_matrix(edge_index, edge_weight, num_nodes)

    f_in_eff = [p["w_l"].shape[0] for p in params]
    f_out_eff = [p["w_l"].shape[1] for p in params]
    f_pad_all = _round_up(max(max(f_in_eff), max(f_out_eff)), 128)

    # ---------------- fused path: whole graph resident in VMEM --------------
    n_pad_f = _round_up(num_nodes, 128)
    fused_bytes = 4 * (2 * n_pad_f * n_pad_f          # A (double-buffer worst case)
                       + 2 * n_pad_f * f_pad_all      # X0
                       + 2 * 2 * f_pad_all * f_pad_all  # W_l + W_r blocks
                       + 2 * f_pad_all                # bias
                       + 2 * n_pad_f * f_pad_all      # output
                       + n_pad_f * f_pad_all)         # activation scratch
    if (not force_tiled) and fused_bytes <= fused_vmem_budget_bytes:
        a_pad = jnp.zeros((n_pad_f, n_pad_f), jnp.float32)
        a_pad = a_pad.at[:num_nodes, :num_nodes].set(a_mat)
        x_pad = jnp.zeros((n_pad_f, f_pad_all), jnp.float32)
        x_pad = x_pad.at[:num_nodes, :x.shape[1]].set(x)
        wl_list, wr_list, b_list = [], [], []
        for p in params:
            wl, wr, b = _pad_weights(p, f_pad_all, f_pad_all)
            wl_list.append(wl)
            wr_list.append(wr)
            b_list.append(b)
        wl_stack = jnp.stack(wl_list)        # (L, F, F)
        wr_stack = jnp.stack(wr_list)        # (L, F, F)
        b_stack = jnp.stack(b_list)          # (L, 1, F)
        vmem_limit = int(min(max(fused_bytes * 2, 32 * 1024 * 1024),
                             48 * 1024 * 1024))
        out = _fused_forward(a_pad, x_pad, wl_stack, wr_stack, b_stack,
                             n_pad_f, f_pad_all, vmem_limit)
        return out[:num_nodes, :f_out_last]

    # ---------------- tiled per-layer path (large graphs) -------------------
    tm = max(128, (min(tm, _round_up(num_nodes, 128)) // 128) * 128)
    n_pad = _round_up(num_nodes, tm)
    a_pad = jnp.zeros((n_pad, n_pad), jnp.float32)
    a_pad = a_pad.at[:num_nodes, :num_nodes].set(a_mat)
    a_pad = a_pad.astype(jnp.bfloat16)       # halve HBM bytes of the A stream
    f_in_pad0 = _round_up(f_in_eff[0], 128)
    x_cur = jnp.zeros((n_pad, f_in_pad0), jnp.float32)
    x_cur = x_cur.at[:num_nodes, :x.shape[1]].set(x)
    for i, p in enumerate(params):
        f_out_pad = _round_up(f_out_eff[i], 128)
        w_l, w_r, b = _pad_weights(p, x_cur.shape[1], f_out_pad)
        x_cur = _sage_layer_tiled(a_pad, x_cur, w_l, w_r, b,
                                  apply_relu=(i != n_layers - 1), tm=tm)
    return x_cur[:num_nodes, :f_out_last]


# --------------------------- pure-JAX reference ------------------------------

def graphnn_reference(params, x, edge_index, edge_weight, mean, std):
    num_nodes = x.shape[0]
    s = jnp.where(std == 0.0, 1.0, std)
    h = (x.astype(jnp.float32) - mean) / s
    a = build_aggregation_matrix(edge_index, edge_weight, num_nodes)
    hp = jax.lax.Precision.HIGHEST
    n_layers = len(params)
    for i, p in enumerate(params):
        agg = jnp.dot(a, h, precision=hp)
        out = (jnp.dot(agg, p["w_l"], precision=hp) + p["b_l"][None, :]
               + jnp.dot(h, p["w_r"], precision=hp))
        if i != n_layers - 1:
            out = jnp.maximum(out, 0.0)
        h = out
    return h


# ----------------------------------- main ------------------------------------

if __name__ == "__main__":
    root = jax.random.PRNGKey(0)

    def make_graph(key, num_nodes, num_edges, neurons):
        ks = jax.random.split(key, 7)
        x = jax.random.normal(ks[0], (num_nodes, neurons[0]), jnp.float32)
        row = jax.random.randint(ks[1], (num_edges,), 0, num_nodes)
        col = jax.random.randint(ks[2], (num_edges,), 0, num_nodes)
        edge_index = jnp.stack([row, col], axis=0).astype(jnp.int32)
        edge_weight = jax.random.uniform(ks[3], (num_edges,), jnp.float32, 0.1, 1.0)
        mean = jax.random.normal(ks[4], (neurons[0],), jnp.float32) * 0.1
        std = jax.random.uniform(ks[5], (neurons[0],), jnp.float32, 0.5, 1.5)
        params = init_graphnn_params(ks[6], neurons)
        return x, edge_index, edge_weight, mean, std, params

    k1, k2 = jax.random.split(root)

    # 1) small graph -> fused single-kernel path
    neurons1 = [8, 32, 16]
    x1, ei1, ew1, m1, s1, p1 = make_graph(k1, 8, 24, neurons1)
    out1 = jax.block_until_ready(graphnn_forward(p1, x1, ei1, ew1, m1, s1))
    ref1 = graphnn_reference(p1, x1, ei1, ew1, m1, s1)
    assert out1.shape == (8, neurons1[-1])
    assert bool(jnp.all(jnp.isfinite(out1)))
    assert bool(jnp.allclose(out1, ref1, rtol=5e-2, atol=5e-2)), \
        float(jnp.max(jnp.abs(out1 - ref1)))

    # 2) bigger graph -> forced through the tiled (grid + accumulator) path
    neurons2 = [16, 64, 32]
    x2, ei2, ew2, m2, s2, p2 = make_graph(k2, 256, 2048, neurons2)
    out2 = jax.block_until_ready(
        graphnn_forward(p2, x2, ei2, ew2, m2, s2, force_tiled=True, tm=128))
    ref2 = graphnn_reference(p2, x2, ei2, ew2, m2, s2)
    assert out2.shape == (256, neurons2[-1])
    assert bool(jnp.all(jnp.isfinite(out2)))
    assert bool(jnp.allclose(out2, ref2, rtol=1e-1, atol=1e-1)), \
        float(jnp.max(jnp.abs(out2 - ref2)))

    print("KERNEL_OK")
</pallas_src>

<mosaic_0001>
module attributes {stable_mosaic.version = 11 : i64} {
  func.func @_fused_graphnn_kernel(%arg0: i32, %arg1: memref<128x128xf32, #tpu.memory_space<vmem>>, %arg2: memref<128x128xf32, #tpu.memory_space<vmem>>, %arg3: memref<1x128x128xf32, #tpu.memory_space<vmem>>, %arg4: memref<1x128x128xf32, #tpu.memory_space<vmem>>, %arg5: memref<1x1x128xf32, #tpu.memory_space<vmem>>, %arg6: memref<128x128xf32, #tpu.memory_space<vmem>>, %arg7: memref<128x128xf32, #tpu.memory_space<vmem>>) attributes {dimension_semantics = [#tpu.dimension_semantics<arbitrary>], iteration_bounds = array<i64: 2>, scalar_prefetch = 0 : i64, scratch_operands = 1 : i64, tpu.core_type = #tpu.core_type<tc>, window_params = [{pipeline_mode = #tpu.pipeline_mode<synchronous>, transform_indices = @transform_0, window_bounds = array<i64: 128, 128>}, {pipeline_mode = #tpu.pipeline_mode<synchronous>, transform_indices = @transform_1, window_bounds = array<i64: 128, 128>}, {transform_indices = @transform_2, window_bounds = array<i64: 1, 128, 128>}, {transform_indices = @transform_3, window_bounds = array<i64: 1, 128, 128>}, {transform_indices = @transform_4, window_bounds = array<i64: 1, 1, 128>}, {pipeline_mode = #tpu.pipeline_mode<synchronous>, transform_indices = @transform_5, window_bounds = array<i64: 128, 128>}]} {
    %c0_i32 = arith.constant 0 : i32
    %0 = arith.cmpi eq, %arg0, %c0_i32 : i32
    %1 = arith.extui %0 : i1 to i32
    %c0_i32_0 = arith.constant 0 : i32
    %2 = arith.cmpi ne, %1, %c0_i32_0 : i32
    scf.if %2 {
      %c0_18 = arith.constant 0 : index
      %c0_19 = arith.constant 0 : index
      %23 = vector.load %arg2[%c0_18, %c0_19] : memref<128x128xf32, #tpu.memory_space<vmem>>, vector<128x128xf32>
      %c0_20 = arith.constant 0 : index
      %c0_21 = arith.constant 0 : index
      %24 = vector.load %arg7[%c0_20, %c0_21] : memref<128x128xf32, #tpu.memory_space<vmem>>, vector<128x128xf32>
      tpu.vector_store %arg7[%c0_20, %c0_21], %23 {strides = array<i32>} : memref<128x128xf32, #tpu.memory_space<vmem>>, vector<128x128xf32>,
    } else {
    }
    %c0 = arith.constant 0 : index
    %c0_1 = arith.constant 0 : index
    %3 = vector.load %arg7[%c0, %c0_1] : memref<128x128xf32, #tpu.memory_space<vmem>>, vector<128x128xf32>
    %c0_2 = arith.constant 0 : index
    %c0_3 = arith.constant 0 : index
    %4 = vector.load %arg1[%c0_2, %c0_3] : memref<128x128xf32, #tpu.memory_space<vmem>>, vector<128x128xf32>
    %cst = arith.constant dense<0.000000e+00> : vector<128x128xf32>
    %5 = tpu.matmul %4, %3, %cst {dimension_numbers = #tpu.dot_dimension_numbers<[1], [0], [0], [1], [0, 0, 1, 1], [], []>} : vector<128x128xf32>, vector<128x128xf32>, vector<128x128xf32> -> vector<128x128xf32>
    %c0_4 = arith.constant 0 : index
    %c0_5 = arith.constant 0 : index
    %c0_6 = arith.constant 0 : index
    %6 = vector.load %arg3[%c0_4, %c0_5, %c0_6] : memref<1x128x128xf32, #tpu.memory_space<vmem>>, vector<1x128x128xf32>
    %7 = vector.shape_cast %6 : vector<1x128x128xf32> to vector<128x128xf32>
    %cst_7 = arith.constant dense<0.000000e+00> : vector<128x128xf32>
    %8 = tpu.matmul %5, %7, %cst_7 {dimension_numbers = #tpu.dot_dimension_numbers<[1], [0], [0], [1], [0, 0, 1, 1], [], []>} : vector<128x128xf32>, vector<128x128xf32>, vector<128x128xf32> -> vector<128x128xf32>
    %c0_8 = arith.constant 0 : index
    %c0_9 = arith.constant 0 : index
    %c0_10 = arith.constant 0 : index
    %9 = vector.load %arg4[%c0_8, %c0_9, %c0_10] : memref<1x128x128xf32, #tpu.memory_space<vmem>>, vector<1x128x128xf32>
    %10 = vector.shape_cast %9 : vector<1x128x128xf32> to vector<128x128xf32>
    %cst_11 = arith.constant dense<0.000000e+00> : vector<128x128xf32>
    %11 = tpu.matmul %3, %10, %cst_11 {dimension_numbers = #tpu.dot_dimension_numbers<[1], [0], [0], [1], [0, 0, 1, 1], [], []>} : vector<128x128xf32>, vector<128x128xf32>, vector<128x128xf32> -> vector<128x128xf32>
    %12 = arith.addf %8, %11 : vector<128x128xf32>
    %c0_12 = arith.constant 0 : index
    %c0_13 = arith.constant 0 : index
    %c0_14 = arith.constant 0 : index
    %13 = vector.load %arg5[%c0_12, %c0_13, %c0_14] : memref<1x1x128xf32, #tpu.memory_space<vmem>>, vector<1x1x128xf32>
    %14 = vector.shape_cast %13 : vector<1x1x128xf32> to vector<1x128xf32>
    %15 = vector.broadcast %14 : vector<1x128xf32> to vector<128x128xf32>
    %16 = arith.addf %12, %15 : vector<128x128xf32>
    %c1_i32 = arith.constant 1 : i32
    %17 = arith.cmpi ne, %arg0, %c1_i32 : i32
    %18 = arith.extui %17 : i1 to i32
    %c0_i32_15 = arith.constant 0 : i32
    %19 = arith.cmpi ne, %18, %c0_i32_15 : i32
    scf.if %19 {
      %cst_18 = arith.constant 0.000000e+00 : f32
      %23 = vector.broadcast %cst_18 : f32 to vector<128x128xf32>
      %24 = arith.maximumf %16, %23 : vector<128x128xf32>
      %c0_19 = arith.constant 0 : index
      %c0_20 = arith.constant 0 : index
      %25 = vector.load %arg7[%c0_19, %c0_20] : memref<128x128xf32, #tpu.memory_space<vmem>>, vector<128x128xf32>
      tpu.vector_store %arg7[%c0_19, %c0_20], %24 {strides = array<i32>} : memref<128x128xf32, #tpu.memory_space<vmem>>, vector<128x128xf32>,
    } else {
    }
    %c1_i32_16 = arith.constant 1 : i32
    %20 = arith.cmpi eq, %arg0, %c1_i32_16 : i32
    %21 = arith.extui %20 : i1 to i32
    %c0_i32_17 = arith.constant 0 : i32
    %22 = arith.cmpi ne, %21, %c0_i32_17 : i32
    scf.if %22 {
      %c0_18 = arith.constant 0 : index
      %c0_19 = arith.constant 0 : index
      %23 = vector.load %arg6[%c0_18, %c0_19] : memref<128x128xf32, #tpu.memory_space<vmem>>, vector<128x128xf32>
      tpu.vector_store %arg6[%c0_18, %c0_19], %16 {strides = array<i32>} : memref<128x128xf32, #tpu.memory_space<vmem>>, vector<128x128xf32>,
    } else {
    }
    return
  }
  func.func @transform_0(%arg0: i32) -> (i32, i32) {
    %c0_i32 = arith.constant 0 : i32
    %c0_i32_0 = arith.constant 0 : i32
    %c0_i32_1 = arith.constant 0 : i32
    return %c0_i32, %c0_i32_0 : i32, i32
  }
  func.func @transform_1(%arg0: i32) -> (i32, i32) {
    %c0_i32 = arith.constant 0 : i32
    %c0_i32_0 = arith.constant 0 : i32
    %c0_i32_1 = arith.constant 0 : i32
    return %c0_i32, %c0_i32_0 : i32, i32
  }
  func.func @transform_2(%arg0: i32) -> (i32, i32, i32) {
    %c0_i32 = arith.constant 0 : i32
    %c0_i32_0 = arith.constant 0 : i32
    %c0_i32_1 = arith.constant 0 : i32
    return %arg0, %c0_i32, %c0_i32_0 : i32, i32, i32
  }
  func.func @transform_3(%arg0: i32) -> (i32, i32, i32) {
    %c0_i32 = arith.constant 0 : i32
    %c0_i32_0 = arith.constant 0 : i32
    %c0_i32_1 = arith.constant 0 : i32
    return %arg0, %c0_i32, %c0_i32_0 : i32, i32, i32
  }
  func.func @transform_4(%arg0: i32) -> (i32, i32, i32) {
    %c0_i32 = arith.constant 0 : i32
    %c0_i32_0 = arith.constant 0 : i32
    %c0_i32_1 = arith.constant 0 : i32
    return %arg0, %c0_i32, %c0_i32_0 : i32, i32, i32
  }
  func.func @transform_5(%arg0: i32) -> (i32, i32) {
    %c0_i32 = arith.constant 0 : i32
    %c0_i32_0 = arith.constant 0 : i32
    %c0_i32_1 = arith.constant 0 : i32
    return %c0_i32, %c0_i32_0 : i32, i32
  }
}

</mosaic_0001>

<bundles_post_ra>
// kernel: tpu_custom_call.1
= control target key start
LH: loop header
LB: loop body
LE: loop exit
PB: predicated region body
PF: predicated region fallthrough
CT: control target
= control target key end

     0   :  { %10 = vsyncpa [#allocation4], 0  ;;  %s2146_s0 = inlined_call_operand.hbm [shape: f32[128,128], index: 0, kind: input, shape index: {}]   ;;  %s2147_s1 = inlined_call_operand.hbm [shape: f32[128,128], index: 1, kind: input, shape index: {}]   ;;  %s2148_s2 = inlined_call_operand.hbm [shape: f32[2,128,128], index: 2, kind: input, shape index: {}]   ;;  %s2149_s3 = inlined_call_operand.hbm [shape: f32[2,128,128], index: 3, kind: input, shape index: {}]   ;;  %s2150_s4 = inlined_call_operand.vmem [shape: f32[2,1,128], index: 4, kind: input, shape index: {}]   ;;  %s2151_s5 = inlined_call_operand.hbm [shape: f32[128,128], index: 5, kind: output, shape index: {}]  }
   0x1   :  { %11 = vsyncpa [#allocation7], 0 }
   0x2   :  { %12 = vsyncpa [#allocation5], 0  ;;  %s1753_s18 = smov 0   ;;  %s1755_s19 = smov 0  }
   0x3   :  { %s1757_s20 = smov 0   ;;  %s1759_s21 = smov 0  }
   0x4 LB: > { %s1772_s22 = sadd.s32 4294967295, %s1712_s21   ;;  %s1775_s23 = sadd.s32 1, %s1712_s21   ;;  %s1712_s21 = sphi %s1759_s21, %s2182_s21   ;;  %s1708_s20 = sphi %s1757_s20, %s2181_s20   ;;  %s1704_s19 = sphi %s1755_s19, %s2180_s19   ;;  %s1700_s18 = sphi %s1753_s18, %s2179_s18  }
   0x5   : > { %s64_s24 = ssub.s32 %s1712_s21, %s1775_s23  ;;  %s67_s25 = sadd.s32 1, %s1708_s20 }
   0x6   : > { %p65_p0 = scmp.eq.s32.totalorder %s64_s24, 0  ;;  %p74_p1 = scmp.ne.s32.totalorder %s1708_s20, %s1704_s19 }
   0x7   : > { %p75_p2 = scmp.eq.s32.totalorder %s1712_s21, 0  ;;  %p80_p3 = scmp.ne.s32.totalorder %s1704_s19, %s1700_s18 }
   0x8   : > { %s1785_s26 = scalar_select %p65_p0, %s1708_s20, %s67_s25  }
   0x9   : > { %p1787_p4 = por %p75_p2, %p74_p1  ;;  %p2152_p5 = scmp.eq.s32.totalorder %s1772_s22, 0 }
   0xa   : > { %p1031_p6 = scmp.ge.s32.totalorder %s1712_s21, 1  ;;  %p164_p7 = scmp.lt.s32.totalorder %s1712_s21, 3 }
   0xb   : > { %p1796_p8 = por %p2152_p5, %p80_p3  ;;  %s1714_s30 = smov [#allocation3]  }
   0xc   : > { %p1801_p10 = pnand %p1031_p6, %p164_p7  ;;  %s176_s6 = sshll.u32 %s1714_s30, 4  ;;  %s177_s6 = int_to_ptr.vmem [resolvable:$true] %s176_s6 }
   0xd   : > { %s2161_s28 = scalar_select %p1796_p8, 1, 0 }
   0xe   : > { %s2162_s29 = scalar_select %p1801_p10, 1, 0 }
   0xf   : > { %p1464_p11 = pneg %p1801_p10  ;;  %p1480_p13 = scmp.lt.s32.totalorder %s1712_s21, 2 }
  0x10   : > { %s203_s8 = sand.u32 1, %s1712_s21   ;;  %s205_s9 = sand.u32 1, %s1708_s20  }
  0x11   : > { %p1809_p12 = pnand %p1464_p11, %p2152_p5  ;;  %p1818_p0 = pnand %p1480_p13, %p1787_p4 }
  0x12   : > { %s1524_s13 = scalar_lea.hbm %s2146_s0, 2048 }
  0x13   : > { %s2164_s10 = scalar_select %p1818_p0, 1, 0 }
  0x14   : > { %p1525_p1 = scmp.ne.s32.totalorder %s2146_s0, %s1524_s13  ;;  %p2157_p2 = pneg %p1809_p12 }
  0x15   : > { %p1531_p4 = scmp.lt.u32.totalorder %s1524_s13, %s2146_s0 }
  0x16   : > { %p1527_p3 = pnand %p2157_p2, %p1525_p1 }
  0x18   : > { %p1528_p6 = pneg %p1527_p3 }
  0x1a   : > { %p1533_p7 = pnand %p1531_p4, %p1528_p6 }
  0x1c   : > { %1536 = shalt.err (!%p1533_p7)
}
  0x1d   : > { %s1537_s18 = scalar_lea.vmem %s177_s6, 2048  ;;  %p1545_p5 = scmp.lt.s32.totalorder %s177_s6, %s177_s6 }
  0x1e   : > { %p1538_p11 = scmp.ne.s32.totalorder %s177_s6, %s1537_s18  ;;  %p1546_p8 = scmp.lt.s32.totalorder %s1537_s18, %s1537_s18 }
  0x20   : > { %p1540_p13 = pnand %p1538_p11, %p2157_p2  ;;  %p1547_p10 = por %p1546_p8, %p1545_p5 }
  0x22   : > { %p1541_p9 = pneg %p1540_p13 }
  0x24   : > { %p1548_p0 = pnand %p1547_p10, %p1541_p9 }
  0x26   : > { %1551 = shalt.err (!%p1548_p0)
}
  0x27   : > { %s1715_s24 = smov 128   ;;  %s1716_s25 = smov 8  }
  0x28   : > { %1467 = dma.hbm_to_vmem [thread:$0]  (!%p1809_p12), %s2146_s0, 2048, %s177_s6, [#allocation4], %s1715_s24, %s1715_s24, %s1716_s25  }
  0x29   : > { %s1847_s11 = sshll.u32 %s205_s9, 7  ;;  %s2156_s12 = sshll.u32 %s1712_s21, 11 }
  0x2a   : > { %s1855_s15 = scalar_lea.hbm %s2148_s2, %s2156_s12  ;;  %s207_s16 = scalar_lea.vmem [#allocation8], %s1847_s11 }
  0x2b   : > { %s214_s17 = sshll.u32 %s207_s16, 4  ;;  %s1717_s18 = smov [#allocation6]   ;;  %s1858_s17 = int_to_ptr.vmem [resolvable:$true] %s214_s17 }
  0x2c   : > { %s1860_s6 = sshll.u32 %s1717_s18, 4  ;;  %s1864_s9 = scalar_lea.sflag [#allocation4], %s203_s8  ;;  %s190_s6 = int_to_ptr.vmem [resolvable:$true] %s1860_s6 }
  0x2d   : > { %s1552_s27 = scalar_lea.hbm %s1855_s15, 2048  ;;  %p2165_p8 = scmp.ne.s32.totalorder %s2164_s10, 0 }
  0x2e   : > { %p1553_p5 = scmp.ne.s32.totalorder %s1855_s15, %s1552_s27  ;;  %s1557_s14 = scalar_lea.hbm %s2148_s2, 4096 }
  0x2f   : > { %p2158_p9 = pneg %p2165_p8  ;;  %p1558_p1 = scmp.lt.u32.totalorder %s1855_s15, %s2148_s2 }
  0x30   : > { %p1559_p3 = scmp.lt.u32.totalorder %s1557_s14, %s1552_s27  ;;  %p1561_p4 = scmp.lt.u32.totalorder %s1552_s27, %s1855_s15 }
  0x31   : > { %p1555_p10 = pnand %p2158_p9, %p1553_p5 }
  0x32   : > { %p1560_p6 = por %p1559_p3, %p1558_p1 }
  0x33   : > { %p1556_p0 = pneg %p1555_p10 }
  0x34   : > { %p1562_p7 = por %p1561_p4, %p1560_p6 }
  0x36   : > { %p1563_p11 = pnand %p1562_p7, %p1556_p0 }
  0x38   : > { %1566 = shalt.err (!%p1563_p11)
}
  0x39   : > { %s1567_s8 = scalar_lea.vmem %s1858_s17, 2048  ;;  %s1718_s18 = smov [#allocation8]  }
  0x3a   : > { %p1568_p13 = scmp.ne.s32.totalorder %s1858_s17, %s1567_s8  ;;  %s1572_s30 = sshll.u32 %s1718_s18, 4  ;;  %s1573_s30 = int_to_ptr.vmem [resolvable:$false] %s1572_s30 }
  0x3b   : > { %s1574_s12 = scalar_lea.vmem %s1573_s30, 4096  ;;  %p1575_p2 = scmp.lt.s32.totalorder %s1858_s17, %s1573_s30 }
  0x3c   : > { %p1570_p5 = pnand %p1568_p13, %p2158_p9  ;;  %p1576_p1 = scmp.lt.s32.totalorder %s1574_s12, %s1567_s8 }
  0x3e   : > { %p1571_p10 = pneg %p1570_p5  ;;  %p1577_p3 = por %p1576_p1, %p1575_p2 }
  0x40   : > { %p1578_p6 = pnand %p1577_p3, %p1571_p10 }
  0x42   : > { %1581 = shalt.err (!%p1578_p6)
}
  0x43   : > { %1474 = dma.hbm_to_vmem [thread:$0]  (!%p2165_p8), %s1855_s15, 2048, %s1858_s17, %s1864_s9, %s1715_s24, %s1715_s24, %s1716_s25  }
  0x44   : > { %s1582_s14 = scalar_lea.hbm %s2147_s1, 2048  ;;  %p2166_p0 = pneg %p1809_p12 }
  0x45   : > { %p1583_p2 = scmp.ne.s32.totalorder %s2147_s1, %s1582_s14  ;;  %p1589_p11 = scmp.lt.u32.totalorder %s1582_s14, %s2147_s1 }
  0x47   : > { %p1585_p4 = pnand %p1583_p2, %p2166_p0 }
  0x49   : > { %p1586_p7 = pneg %p1585_p4 }
  0x4b   : > { %p1591_p13 = pnand %p1589_p11, %p1586_p7 }
  0x4d   : > { %1594 = shalt.err (!%p1591_p13)
}
  0x4e   : > { %s1595_s15 = scalar_lea.vmem %s190_s6, 2048  ;;  %p2167_p10 = pmov %p2166_p0 }
  0x4f   : > { %p1596_p5 = scmp.ne.s32.totalorder %s190_s6, %s1595_s15  ;;  %p1603_p6 = scmp.lt.s32.totalorder %s190_s6, %s190_s6 }
  0x50   : > { %p1604_p9 = scmp.lt.s32.totalorder %s1595_s15, %s1595_s15 }
  0x51   : > { %p1598_p1 = pnand %p1596_p5, %p2167_p10 }
  0x52   : > { %p1605_p8 = por %p1604_p9, %p1603_p6 }
  0x53   : > { %p1599_p3 = pneg %p1598_p1 }
  0x55   : > { %p1606_p0 = pnand %p1605_p8, %p1599_p3 }
  0x57   : > { %1609 = shalt.err (!%p1606_p0)
}
  0x58   : > { %1470 = dma.hbm_to_vmem [thread:$0]  (!%p1809_p12), %s2147_s1, 2048, %s190_s6, [#allocation7], %s1715_s24, %s1715_s24, %s1716_s25  }
  0x59   : > { %s2168_s27 = sshll.u32 %s1712_s21, 11  ;;  %s228_s7 = scalar_lea.vmem [#allocation9], %s1847_s11 }
  0x5a   : > { %s1924_s16 = scalar_lea.hbm %s2149_s3, %s2168_s27  ;;  %s235_s8 = sshll.u32 %s228_s7, 4  ;;  %s1927_s8 = int_to_ptr.vmem [resolvable:$true] %s235_s8 }
  0x5b   : > { %s1610_s18 = scalar_lea.hbm %s1924_s16, 2048  ;;  %p2169_p9 = scmp.ne.s32.totalorder %s2164_s10, 0 }
  0x5c   : > { %p1611_p8 = scmp.ne.s32.totalorder %s1924_s16, %s1610_s18  ;;  %s1615_s30 = scalar_lea.hbm %s2149_s3, 4096 }
  0x5d   : > { %p2170_p2 = pneg %p2169_p9  ;;  %p1616_p7 = scmp.lt.u32.totalorder %s1924_s16, %s2149_s3 }
  0x5e   : > { %p1617_p11 = scmp.lt.u32.totalorder %s1615_s30, %s1610_s18  ;;  %p1619_p5 = scmp.lt.u32.totalorder %s1610_s18, %s1924_s16 }
  0x5f   : > { %p1613_p4 = pnand %p1611_p8, %p2170_p2 }
  0x60   : > { %p1618_p13 = por %p1617_p11, %p1616_p7 }
  0x61   : > { %p1614_p12 = pneg %p1613_p4 }
  0x62   : > { %p1620_p10 = por %p1619_p5, %p1618_p13 }
  0x64   : > { %p1621_p1 = pnand %p1620_p10, %p1614_p12 }
  0x66   : > { %1624 = shalt.err (!%p1621_p1)
}
  0x67   : > { %s1625_s11 = scalar_lea.vmem %s1927_s8, 2048  ;;  %p2171_p6 = pmov %p2170_p2 }
  0x68   : > { %p1626_p3 = scmp.ne.s32.totalorder %s1927_s8, %s1625_s11  ;;  %s1719_s12 = smov [#allocation9]  }
  0x69   : > { %s1630_s27 = sshll.u32 %s1719_s12, 4  ;;  %s1631_s27 = int_to_ptr.vmem [resolvable:$false] %s1630_s27 }
  0x6a   : > { %p1628_p0 = pnand %p1626_p3, %p2171_p6  ;;  %s1632_s13 = scalar_lea.vmem %s1631_s27, 4096 }
  0x6b   : > { %p1633_p2 = scmp.lt.s32.totalorder %s1927_s8, %s1631_s27  ;;  %p1634_p4 = scmp.lt.s32.totalorder %s1632_s13, %s1625_s11 }
  0x6c   : > { %p1629_p8 = pneg %p1628_p0 }
  0x6d   : > { %p1635_p7 = por %p1634_p4, %p1633_p2 }
  0x6f   : > { %p1636_p11 = pnand %p1635_p7, %p1629_p8 }
  0x71   : > { %1639 = shalt.err (!%p1636_p11)
}
  0x72   : > { %1477 = dma.hbm_to_vmem [thread:$0]  (!%p2169_p9), %s1924_s16, 2048, %s1927_s8, %s1864_s9, %s1715_s24, %s1715_s24, %s1716_s25  }
  0x73   : > { %p2172_p12 = scmp.ne.s32.totalorder %s2162_s29, 0 }
  0x74   : > { %p2173_p13 = scmp.eq.s32.totalorder (!%p2172_p12), %s1772_s22, 0 }
  0x75   : > { %253 = sbr.rel (%p2172_p12) target bundleno = 677 (0x2a5), region = 40 }
  0x7c   : > { %1683 = dma.done.wait (%p2173_p13), [#allocation4], 2048   ;;  %p2174_p5 = pmov %p2173_p13 }
  0x7e   : > { %1685 = vsyncadd (%p2174_p5), [#allocation4], 4294965248  ;;  %p2175_p10 = pmov %p2174_p5 }
  0x7f   : > { %p2176_p1 = pmov %p2174_p5 }
  0x80   : > { %1687 = dma.done.wait (%p2175_p10), [#allocation7], 2048  }
  0x81   : > { %1689 = vsyncadd (%p2176_p1), [#allocation7], 4294965248  ;;  %s263_s10 = sand.u32 1, %s1772_s22   ;;  %s265_s24 = sand.u32 1, %s1704_s19  }
  0x82   : > { %s1044_s25 = sshll.u32 %s265_s24, 7  ;;  %s264_s29 = scalar_lea.sflag [#allocation4], %s263_s10 }
  0x83   : > { %s1968_s9 = scalar_lea.vmem [#allocation8], %s1044_s25  ;;  %p2177_p9 = scmp.ne.s32.totalorder %s2161_s28, 0 }
  0x85   : > { %1691 = dma.done.wait (%p2177_p9), %s264_s29, 4096  }
  0x86   : > { %1693 = vsyncadd (%p2177_p9), %s264_s29, 4294963200  ;;  %p306_p3 = scmp.lt.s32.totalorder %s1772_s22, 1  ;;  %s1982_s18 = scalar_lea.vmem [#allocation9], %s1044_s25 }
  0x87   : > { %p2178_p6 = scmp.ne.s32.totalorder %s1772_s22, 0 }
  0x88   : > { %s1976_s14 = scalar_select %p306_p3, %s1772_s22, 1 }
  0x89   : > { %312 = sbr.rel (%p2178_p6) target bundleno = 146 (0x92), region = 60  ;;  %v313_v0 = vld [vmem:[#allocation6] sm:$0xff] (!%p2178_p6)  ;;  %v314_v1 = vld [vmem:[#allocation6 + $0x8] sm:$0xff] (!%p2178_p6)  ;;  %v315_v2 = vld [vmem:[#allocation6 + $0x10] sm:$0xff] (!%p2178_p6) }
  0x8a   : > { %s308_s8 = scalar_lea.vmem %s2150_s4, %s1976_s14  ;;  %329 = vst [vmem:[#allocation2] sm:$0xff] (!%p2178_p6), %v313_v0  ;;  %330 = vst [vmem:[#allocation2 + $0x8] sm:$0xff] (!%p2178_p6), %v314_v1  ;;  %v316_v3 = vld [vmem:[#allocation6 + $0x18] sm:$0xff] (!%p2178_p6)  ;;  %v317_v4 = vld [vmem:[#allocation6 + $0x20] sm:$0xff] (!%p2178_p6) }
  0x8b   : > { %331 = vst [vmem:[#allocation2 + $0x10] sm:$0xff] (!%p2178_p6), %v315_v2  ;;  %v318_v5 = vld [vmem:[#allocation6 + $0x28] sm:$0xff] (!%p2178_p6)  ;;  %332 = vst [vmem:[#allocation2 + $0x18] sm:$0xff] (!%p2178_p6), %v316_v3  ;;  %v319_v6 = vld [vmem:[#allocation6 + $0x30] sm:$0xff] (!%p2178_p6) }
  0x8c   : > { %333 = vst [vmem:[#allocation2 + $0x20] sm:$0xff] (!%p2178_p6), %v317_v4  ;;  %334 = vst [vmem:[#allocation2 + $0x28] sm:$0xff] (!%p2178_p6), %v318_v5  ;;  %v320_v7 = vld [vmem:[#allocation6 + $0x38] sm:$0xff] (!%p2178_p6)  ;;  %v321_v8 = vld [vmem:[#allocation6 + $0x40] sm:$0xff] (!%p2178_p6) }
  0x8d   : > { %335 = vst [vmem:[#allocation2 + $0x30] sm:$0xff] (!%p2178_p6), %v319_v6  ;;  %336 = vst [vmem:[#allocation2 + $0x38] sm:$0xff] (!%p2178_p6), %v320_v7  ;;  %v322_v9 = vld [vmem:[#allocation6 + $0x48] sm:$0xff] (!%p2178_p6)  ;;  %v323_v10 = vld [vmem:[#allocation6 + $0x50] sm:$0xff] (!%p2178_p6) }
  0x8e   : > { %337 = vst [vmem:[#allocation2 + $0x40] sm:$0xff] (!%p2178_p6), %v321_v8  ;;  %v324_v11 = vld [vmem:[#allocation6 + $0x58] sm:$0xff] (!%p2178_p6)  ;;  %338 = vst [vmem:[#allocation2 + $0x48] sm:$0xff] (!%p2178_p6), %v322_v9  ;;  %v325_v12 = vld [vmem:[#allocation6 + $0x60] sm:$0xff] (!%p2178_p6) }
  0x8f   : > { %339 = vst [vmem:[#allocation2 + $0x50] sm:$0xff] (!%p2178_p6), %v323_v10  ;;  %340 = vst [vmem:[#allocation2 + $0x58] sm:$0xff] (!%p2178_p6), %v324_v11  ;;  %v326_v13 = vld [vmem:[#allocation6 + $0x68] sm:$0xff] (!%p2178_p6)  ;;  %v327_v14 = vld [vmem:[#allocation6 + $0x70] sm:$0xff] (!%p2178_p6) }
  0x90   : > { %341 = vst [vmem:[#allocation2 + $0x60] sm:$0xff] %v325_v12  ;;  %342 = vst [vmem:[#allocation2 + $0x68] sm:$0xff] %v326_v13  ;;  %v328_v15 = vld [vmem:[#allocation6 + $0x78] sm:$0xff] }
  0x91   : > { %343 = vst [vmem:[#allocation2 + $0x70] sm:$0xff] %v327_v14  ;;  %344 = vst [vmem:[#allocation2 + $0x78] sm:$0xff] %v328_v15 }
  0x92 PF: > { %v361_v25 = vld [vmem:[#allocation3] sm:$0xff]  ;;  %v539_v32 = vld [vmem:[%s1982_s18 + $0x8] sm:$0xff]  ;;  %v540_v33 = vld [vmem:[%s1982_s18 + $0x10] sm:$0xff]  ;;  %p1048_p0 = scmp.eq.s32.totalorder %s1772_s22, 1 }
  0x93   : > { %v345_v16 = vld [vmem:[#allocation2] sm:$0xff]  ;;  %v1986_v17 = vld [vmem:[#allocation2 + $0x8] sm:$0xff]  ;;  %1184 = vmatprep.mubr.f32.mxu0 %v361_v25  ;;  %v541_v34 = vld [vmem:[%s1982_s18 + $0x18] sm:$0xff] }
  0x94   : > { %v1988_v18 = vld [vmem:[#allocation2 + $0x10] sm:$0xff]  ;;  %v1320_v19 = vpack.c.bf16 %v1986_v17, %v345_v16  ;;  %v1991_v20 = vld [vmem:[#allocation2 + $0x18] sm:$0xff]  ;;  %1240 = vmatprep.mubr.f32.mxu1 %v345_v16  ;;  %v538_v31 = vld [vmem:[%s1982_s18] sm:$0xff]  ;;  %v1356_v36 = vpack.c.bf16 %v541_v34, %v540_v33 }
  0x95   : > { %v1324_v21 = vpack.c.bf16 %v1991_v20, %v1988_v18  ;;  %v1995_v22 = vld [vmem:[#allocation2 + $0x20] sm:$0xff]  ;;  %v1997_v23 = vld [vmem:[#allocation2 + $0x28] sm:$0xff]  ;;  %v1352_v35 = vpack.c.bf16 %v539_v32, %v538_v31  ;;  %v544_v44 = vld [vmem:[%s1982_s18 + $0x30] sm:$0xff] }
  0x96   : > { %1321 = vmatprep.subr.bf16.mxu0 %v1320_v19  ;;  %v1328_v24 = vpack.c.bf16 %v1997_v23, %v1995_v22  ;;  %v2001_v26 = vld [vmem:[#allocation2 + $0x30] sm:$0xff]  ;;  %v2003_v27 = vld [vmem:[#allocation2 + $0x38] sm:$0xff]  ;;  %v542_v38 = vld [vmem:[%s1982_s18 + $0x20] sm:$0xff] }
  0x97   : > { %1323 = vmatpush3.bf16.msra.mxu0 %v1320_v19  ;;  %v1332_v28 = vpack.c.bf16 %v2003_v27, %v2001_v26  ;;  %v2007_v29 = vld [vmem:[#allocation2 + $0x40] sm:$0xff]  ;;  %v2009_v30 = vld [vmem:[#allocation2 + $0x48] sm:$0xff]  ;;  %1353 = vmatprep.subr.bf16.mxu1 %v1352_v35  ;;  %v545_v45 = vld [vmem:[%s1982_s18 + $0x38] sm:$0xff] }
  0x98   : > { %1325 = vmatprep.subr.bf16.mxu0 %v1324_v21  ;;  %v1336_v37 = vpack.c.bf16 %v2009_v30, %v2007_v29  ;;  %v543_v39 = vld [vmem:[%s1982_s18 + $0x28] sm:$0xff]  ;;  %v2019_v40 = vld [vmem:[#allocation2 + $0x50] sm:$0xff]  ;;  %v2021_v41 = vld [vmem:[#allocation2 + $0x58] sm:$0xff]  ;;  %1355 = vmatpush3.bf16.msra.mxu1 %v1352_v35  ;;  %v1364_v48 = vpack.c.bf16 %v545_v45, %v544_v44 }
  0x99   : > { %1357 = vmatprep.subr.bf16.mxu1 %v1356_v36  ;;  %v1360_v42 = vpack.c.bf16 %v543_v39, %v542_v38  ;;  %v1340_v43 = vpack.c.bf16 %v2021_v41, %v2019_v40  ;;  %v2027_v46 = vld [vmem:[#allocation2 + $0x60] sm:$0xff]  ;;  %v2029_v47 = vld [vmem:[#allocation2 + $0x68] sm:$0xff]  ;;  %v2035_v52 = vld [vmem:[#allocation2 + $0x70] sm:$0xff] }
  0x9a   : > { %v1344_v49 = vpack.c.bf16 %v2029_v47, %v2027_v46  ;;  %v546_v50 = vld [vmem:[%s1982_s18 + $0x40] sm:$0xff]  ;;  %v547_v51 = vld [vmem:[%s1982_s18 + $0x48] sm:$0xff]  ;;  %v2037_v53 = vld [vmem:[#allocation2 + $0x78] sm:$0xff] }
  0x9b   : > { %1327 = vmatpush3.bf16.msra.mxu0 %v1324_v21  ;;  %v1368_v54 = vpack.c.bf16 %v547_v51, %v546_v50  ;;  %v1348_v55 = vpack.c.bf16 %v2037_v53, %v2035_v52  ;;  %v548_v56 = vld [vmem:[%s1982_s18 + $0x50] sm:$0xff]  ;;  %v549_v57 = vld [vmem:[%s1982_s18 + $0x58] sm:$0xff]  ;;  %v522_v58 = vld [vmem:[%s1968_s9] sm:$0xff] }
  0x9c   : > { %1329 = vmatprep.subr.bf16.mxu0 %v1328_v24  ;;  %1359 = vmatpush3.bf16.msra.mxu1 %v1356_v36  ;;  %v523_v59 = vld [vmem:[%s1968_s9 + $0x8] sm:$0xff]  ;;  %v1372_v60 = vpack.c.bf16 %v549_v57, %v548_v56  ;;  %v524_v62 = vld [vmem:[%s1968_s9 + $0x10] sm:$0xff]  ;;  %v525_v63 = vld [vmem:[%s1968_s9 + $0x18] sm:$0xff] }
  0x9d   : > { %1361 = vmatprep.subr.bf16.mxu1 %v1360_v42  ;;  %v1384_v61 = vpack.c.bf16 %v523_v59, %v522_v58  ;;  %v550_v0 = vld [vmem:[%s1982_s18 + $0x60] sm:$0xff]  ;;  %v551_v1 = vld [vmem:[%s1982_s18 + $0x68] sm:$0xff]  ;;  %v363_v3 = vld [vmem:[#allocation3 + $0x10] sm:$0xff]  ;;  %v1388_v4 = vpack.c.bf16 %v525_v63, %v524_v62 }
  0x9e   : > { %v362_v2 = vld [vmem:[#allocation3 + $0x8] sm:$0xff]  ;;  %v1376_v5 = vpack.c.bf16 %v551_v1, %v550_v0  ;;  %v526_v6 = vld [vmem:[%s1968_s9 + $0x20] sm:$0xff]  ;;  %v552_v8 = vld [vmem:[%s1982_s18 + $0x70] sm:$0xff] }
  0x9f   : > { %1331 = vmatpush3.bf16.msra.mxu0 %v1328_v24  ;;  %v527_v7 = vld [vmem:[%s1968_s9 + $0x28] sm:$0xff]  ;;  %v553_v9 = vld [vmem:[%s1982_s18 + $0x78] sm:$0xff]  ;;  %v365_v11 = vld [vmem:[#allocation3 + $0x20] sm:$0xff] }
  0xa0   : > { %1333 = vmatprep.subr.bf16.mxu0 %v1332_v28  ;;  %1363 = vmatpush3.bf16.msra.mxu1 %v1360_v42  ;;  %v364_v10 = vld [vmem:[#allocation3 + $0x18] sm:$0xff]  ;;  %v1392_v12 = vpack.c.bf16 %v527_v7, %v526_v6  ;;  %v1380_v13 = vpack.c.bf16 %v553_v9, %v552_v8  ;;  %v528_v14 = vld [vmem:[%s1968_s9 + $0x30] sm:$0xff]  ;;  %v366_v16 = vld [vmem:[#allocation3 + $0x28] sm:$0xff] }
  0xa1   : > { %1365 = vmatprep.subr.bf16.mxu1 %v1364_v48  ;;  %v529_v15 = vld [vmem:[%s1968_s9 + $0x38] sm:$0xff]  ;;  %v367_v19 = vld [vmem:[#allocation3 + $0x30] sm:$0xff]  ;;  %v530_v24 = vld [vmem:[%s1968_s9 + $0x40] sm:$0xff] }
  0xa2   : > { %v1396_v21 = vpack.c.bf16 %v529_v15, %v528_v14  ;;  %v531_v25 = vld [vmem:[%s1968_s9 + $0x48] sm:$0xff]  ;;  %v369_v31 = vld [vmem:[#allocation3 + $0x40] sm:$0xff]  ;;  %v532_v33 = vld [vmem:[%s1968_s9 + $0x50] sm:$0xff] }
  0xa3   : > { %1335 = vmatpush3.bf16.msra.mxu0 %v1332_v28  ;;  %v368_v28 = vld [vmem:[#allocation3 + $0x38] sm:$0xff]  ;;  %v1400_v32 = vpack.c.bf16 %v531_v25, %v530_v24  ;;  %v370_v35 = vld [vmem:[#allocation3 + $0x48] sm:$0xff]  ;;  %v371_v36 = vld [vmem:[#allocation3 + $0x50] sm:$0xff] }
  0xa4   : > { %1337 = vmatprep.subr.bf16.mxu0 %v1336_v37  ;;  %1367 = vmatpush3.bf16.msra.mxu1 %v1364_v48  ;;  %v533_v34 = vld [vmem:[%s1968_s9 + $0x58] sm:$0xff]  ;;  %v534_v38 = vld [vmem:[%s1968_s9 + $0x60] sm:$0xff]  ;;  %v535_v39 = vld [vmem:[%s1968_s9 + $0x68] sm:$0xff] }
  0xa5   : > { %1369 = vmatprep.subr.bf16.mxu1 %v1368_v54  ;;  %v373_v42 = vld [vmem:[#allocation3 + $0x60] sm:$0xff]  ;;  %v537_v44 = vld [vmem:[%s1968_s9 + $0x78] sm:$0xff]  ;;  %v375_v45 = vld [vmem:[#allocation3 + $0x70] sm:$0xff] }
  0xa6   : > { %v1047_v1 = vld [vmem:[%s308_s8] ss:$0 sm:$0xff] }
  0xa7   : > { %1339 = vmatpush3.bf16.msra.mxu0 %v1336_v37  ;;  %v1404_v37 = vpack.c.bf16 %v533_v34, %v532_v33 }
  0xa8   : > { %1341 = vmatprep.subr.bf16.mxu0 %v1340_v43  ;;  %1371 = vmatpush3.bf16.msra.mxu1 %v1368_v54 }
  0xa9   : > { %1373 = vmatprep.subr.bf16.mxu1 %v1372_v60 }
  0xab   : > { %1343 = vmatpush3.bf16.msra.mxu0 %v1340_v43  ;;  %v1408_v43 = vpack.c.bf16 %v535_v39, %v534_v38 }
  0xac   : > { %1345 = vmatprep.subr.bf16.mxu0 %v1344_v49  ;;  %1375 = vmatpush3.bf16.msra.mxu1 %v1372_v60 }
  0xad   : > { %1377 = vmatprep.subr.bf16.mxu1 %v1376_v5 }
  0xaf   : > { %1347 = vmatpush3.bf16.msra.mxu0 %v1344_v49 }
  0xb0   : > { %1349 = vmatprep.subr.bf16.mxu0 %v1348_v55  ;;  %1379 = vmatpush3.bf16.msra.mxu1 %v1376_v5 }
  0xb1   : > { %1381 = vmatprep.subr.bf16.mxu1 %v1380_v13 }
  0xb3   : > { %1351 = vmatpush3.bf16.msra.mxu0 %v1348_v55 }
  0xb4   : > { %1385 = vmatprep.subr.bf16.mxu0 %v1384_v61  ;;  %1383 = vmatpush3.bf16.msra.mxu1 %v1380_v13 }
  0xb5   : > { %1416 = vmatprep.subr.bf16.mxu1 %v1384_v61 }
  0xb6   : > { %1185 = vmatmul.mubr.f32.vlgmr.msra.gmra.mrb[0].mxu0 %v362_v2 }
  0xb7   : > { %1187 = vmatprep.mubr.f32.mxu0 %v363_v3  ;;  %1387 = vmatpush3.bf16.msra.mxu0 %v1384_v61 }
  0xb8   : > { %1389 = vmatprep.subr.bf16.mxu0 %v1388_v4  ;;  %1241 = vmatmul.mubr.f32.vlgmr.msra.gmra.mrb[0].mxu1 %v1986_v17  ;;  %v372_v17 = vld [vmem:[#allocation3 + $0x58] sm:$0xff] }
  0xb9   : > { %1424 = vmatpush3.bf16.msra.mxu1 %v1384_v61  ;;  %1243 = vmatprep.mubr.f32.mxu1 %v1988_v18  ;;  %v536_v18 = vld [vmem:[%s1968_s9 + $0x70] sm:$0xff] }
  0xba   : > { %1188 = vmatmul.mubr.f32.gmra.mrb[2].mxu0 %v364_v10  ;;  %1417 = vmatprep.subr.bf16.mxu1 %v1388_v4  ;;  %v1412_v48 = vpack.c.bf16 %v537_v44, %v536_v18 }
  0xbb   : > { %1190 = vmatprep.mubr.f32.mxu0 %v365_v11  ;;  %1391 = vmatpush3.bf16.msra.mxu0 %v1388_v4 }
  0xbc   : > { %1393 = vmatprep.subr.bf16.mxu0 %v1392_v12  ;;  %1244 = vmatmul.mubr.f32.gmra.mrb[2].mxu1 %v1991_v20  ;;  %v374_v20 = vld [vmem:[#allocation3 + $0x68] sm:$0xff] }
  0xbd   : > { %1425 = vmatpush3.bf16.msra.mxu1 %v1388_v4  ;;  %1246 = vmatprep.mubr.f32.mxu1 %v1995_v22  ;;  %v376_v22 = vld [vmem:[#allocation3 + $0x78] sm:$0xff] }
  0xbe   : > { %1191 = vmatmul.mubr.f32.gmra.mrb[4].mxu0 %v366_v16  ;;  %1418 = vmatprep.subr.bf16.mxu1 %v1392_v12 }
  0xbf   : > { %1193 = vmatprep.mubr.f32.mxu0 %v367_v19  ;;  %1395 = vmatpush3.bf16.msra.mxu0 %v1392_v12 }
  0xc0   : > { %1397 = vmatprep.subr.bf16.mxu0 %v1396_v21  ;;  %1247 = vmatmul.mubr.f32.gmra.mrb[4].mxu1 %v1997_v23 }
  0xc1   : > { %1426 = vmatpush3.bf16.msra.mxu1 %v1392_v12  ;;  %1249 = vmatprep.mubr.f32.mxu1 %v2001_v26 }
  0xc2   : > { %1194 = vmatmul.mubr.f32.gmra.mrb[6].mxu0 %v368_v28  ;;  %1419 = vmatprep.subr.bf16.mxu1 %v1396_v21 }
  0xc3   : > { %1196 = vmatprep.mubr.f32.mxu0 %v369_v31  ;;  %1399 = vmatpush3.bf16.msra.mxu0 %v1396_v21 }
  0xc4   : > { %1401 = vmatprep.subr.bf16.mxu0 %v1400_v32  ;;  %1250 = vmatmul.mubr.f32.gmra.mrb[6].mxu1 %v2003_v27 }
  0xc5   : > { %1427 = vmatpush3.bf16.msra.mxu1 %v1396_v21  ;;  %1252 = vmatprep.mubr.f32.mxu1 %v2007_v29 }
  0xc6   : > { %1197 = vmatmul.mubr.f32.gmra.mrb[8].mxu0 %v370_v35  ;;  %1420 = vmatprep.subr.bf16.mxu1 %v1400_v32 }
  0xc7   : > { %1199 = vmatprep.mubr.f32.mxu0 %v371_v36  ;;  %1403 = vmatpush3.bf16.msra.mxu0 %v1400_v32 }
  0xc8   : > { %1405 = vmatprep.subr.bf16.mxu0 %v1404_v37  ;;  %1253 = vmatmul.mubr.f32.gmra.mrb[8].mxu1 %v2009_v30 }
  0xc9   : > { %1428 = vmatpush3.bf16.msra.mxu1 %v1400_v32  ;;  %1255 = vmatprep.mubr.f32.mxu1 %v2019_v40 }
  0xca   : > { %1200 = vmatmul.mubr.f32.gmra.mrb[10].mxu0 %v372_v17  ;;  %1421 = vmatprep.subr.bf16.mxu1 %v1404_v37 }
  0xcb   : > { %1202 = vmatprep.mubr.f32.mxu0 %v373_v42  ;;  %1407 = vmatpush3.bf16.msra.mxu0 %v1404_v37 }
  0xcc   : > { %1409 = vmatprep.subr.bf16.mxu0 %v1408_v43  ;;  %1256 = vmatmul.mubr.f32.gmra.mrb[10].mxu1 %v2021_v41 }
  0xcd   : > { %1429 = vmatpush3.bf16.msra.mxu1 %v1404_v37  ;;  %1258 = vmatprep.mubr.f32.mxu1 %v2027_v46 }
  0xce   : > { %1203 = vmatmul.mubr.f32.gmra.mrb[12].mxu0 %v374_v20  ;;  %1422 = vmatprep.subr.bf16.mxu1 %v1408_v43 }
  0xcf   : > { %1205 = vmatprep.mubr.f32.mxu0 %v375_v45  ;;  %1411 = vmatpush3.bf16.msra.mxu0 %v1408_v43 }
  0xd0   : > { %1413 = vmatprep.subr.bf16.mxu0 %v1412_v48  ;;  %1259 = vmatmul.mubr.f32.gmra.mrb[12].mxu1 %v2029_v47 }
  0xd1   : > { %1430 = vmatpush3.bf16.msra.mxu1 %v1408_v43  ;;  %1261 = vmatprep.mubr.f32.mxu1 %v2035_v52 }
  0xd2   : > { %1206 = vmatmul.mubr.f32.gmra.mrb[14].mxu0 %v376_v22  ;;  %1423 = vmatprep.subr.bf16.mxu1 %v1412_v48 }
  0xd3   : > { %1415 = vmatpush3.bf16.msra.mxu0 %v1412_v48 }
  0xd4   : > { %1262 = vmatmul.mubr.f32.gmra.mrb[14].mxu1 %v2037_v53 }
  0xd5   : > { %1431 = vmatpush3.bf16.msra.mxu1 %v1412_v48 }
 0x189   : > { %v1186_v23 = vpop.f32.mrb[0].mxu0 }
 0x18a   : > { %v443_v26 = vpop.f32.mrb[1].mxu0 }
 0x18b   : > { %1296 = vmatprep.mubr.f32.mxu0 %v443_v26  ;;  %v1242_v41 = vpop.f32.mrb[0].mxu1 }
 0x18c   : > { %1297 = vmatmul.mubr.f32.vlgmr.msra.gmra.mrb[16].mxu0 %v1186_v23  ;;  %v620_v47 = vpop.f32.mrb[1].mxu1 }
 0x18d   : > { %v1189_v27 = vpop.f32.mrb[2].mxu0 }
 0x18e   : > { %v453_v29 = vpop.f32.mrb[3].mxu0 }
 0x18f   : > { %1299 = vmatprep.mubr.f32.mxu0 %v453_v29  ;;  %v1245_v50 = vpop.f32.mrb[2].mxu1 }
 0x190   : > { %1300 = vmatmul.mubr.f32.gmra.mrb[18].mxu0 %v1189_v27  ;;  %v630_v52 = vpop.f32.mrb[3].mxu1 }
 0x191   : > { %v1192_v30 = vpop.f32.mrb[4].mxu0 }
 0x192   : > { %v463_v40 = vpop.f32.mrb[5].mxu0 }
 0x193   : > { %1302 = vmatprep.mubr.f32.mxu0 %v463_v40  ;;  %v1248_v54 = vpop.f32.mrb[4].mxu1 }
 0x194   : > { %1303 = vmatmul.mubr.f32.gmra.mrb[20].mxu0 %v1192_v30  ;;  %v640_v56 = vpop.f32.mrb[5].mxu1 }
 0x195   : > { %v1195_v46 = vpop.f32.mrb[6].mxu0 }
 0x196   : > { %v473_v49 = vpop.f32.mrb[7].mxu0 }
 0x197   : > { %1305 = vmatprep.mubr.f32.mxu0 %v473_v49  ;;  %v1251_v58 = vpop.f32.mrb[6].mxu1 }
 0x198   : > { %1306 = vmatmul.mubr.f32.gmra.mrb[22].mxu0 %v1195_v46  ;;  %v650_v60 = vpop.f32.mrb[7].mxu1 }
 0x199   : > { %v1198_v51 = vpop.f32.mrb[8].mxu0 }
 0x19a   : > { %v483_v53 = vpop.f32.mrb[9].mxu0 }
 0x19b   : > { %1308 = vmatprep.mubr.f32.mxu1 %v483_v53 }
 0x19c   : > { %1309 = vmatmul.mubr.f32.vlgmr.msra.gmra.mrb[8].mxu1 %v1198_v51 }
 0x19d   : > { %v1201_v55 = vpop.f32.mrb[10].mxu0 }
 0x19e   : > { %v493_v57 = vpop.f32.mrb[11].mxu0 }
 0x19f   : > { %1311 = vmatprep.mubr.f32.mxu1 %v493_v57 }
 0x1a0   : > { %1312 = vmatmul.mubr.f32.gmra.mrb[10].mxu1 %v1201_v55 }
 0x1a1   : > { %v1204_v59 = vpop.f32.mrb[12].mxu0 }
 0x1a2   : > { %v503_v61 = vpop.f32.mrb[13].mxu0 }
 0x1a3   : > { %1314 = vmatprep.mubr.f32.mxu1 %v503_v61 }
 0x1a4   : > { %1315 = vmatmul.mubr.f32.gmra.mrb[12].mxu1 %v1204_v59 }
 0x1a5   : > { %v1207_v62 = vpop.f32.mrb[14].mxu0 }
 0x1a6   : > { %v513_v63 = vpop.f32.mrb[15].mxu0 }
 0x1a7   : > { %1317 = vmatprep.mubr.f32.mxu1 %v513_v63 }
 0x1a8   : > { %1318 = vmatmul.mubr.f32.gmra.mrb[14].mxu1 %v1207_v62 }
 0x25f   : > { %v1298_v0 = vpop.f32.mrb[16].mxu0 }
 0x260   : > { %v771_v2 = vadd.f32 %v1298_v0, %v1242_v41  ;;  %v765_v3 = vpop.f32.mrb[17].mxu0 }
 0x261   : > { %v766_v4 = vadd.f32 %v765_v3, %v620_v47 }
 0x262   : > { %v2083_v5 = vadd.f32 %v1047_v1, %v771_v2 }
 0x263   : > { %v2085_v6 = vadd.f32 %v1047_v1, %v766_v4  ;;  %v1301_v7 = vpop.f32.mrb[18].mxu0 }
 0x264   : > { %v781_v8 = vadd.f32 %v1301_v7, %v1245_v50  ;;  %v775_v9 = vpop.f32.mrb[19].mxu0  ;;  %v872_v27 = vmax.f32 (!%p1048_p0), %v2083_v5, 0.0 }
 0x265   : > { %v776_v10 = vadd.f32 %v775_v9, %v630_v52  ;;  %v871_v26 = vmax.f32 (!%p1048_p0), %v2085_v6, 0.0 }
 0x266   : > { %v2087_v11 = vadd.f32 %v1047_v1, %v781_v8  ;;  %888 = vst [vmem:[#allocation2 + $0x8] sm:$0xff] (!%p1048_p0), %v872_v27 }
 0x267   : > { %v2089_v12 = vadd.f32 %v1047_v1, %v776_v10  ;;  %v1304_v13 = vpop.f32.mrb[20].mxu0  ;;  %887 = vst [vmem:[#allocation2] sm:$0xff] (!%p1048_p0), %v871_v26 }
 0x268   : > { %v791_v14 = vadd.f32 %v1304_v13, %v1248_v54  ;;  %v785_v15 = vpop.f32.mrb[21].mxu0  ;;  %v874_v30 = vmax.f32 (!%p1048_p0), %v2087_v11, 0.0 }
 0x269   : > { %v786_v16 = vadd.f32 %v785_v15, %v640_v56  ;;  %v873_v29 = vmax.f32 (!%p1048_p0), %v2089_v12, 0.0 }
 0x26a   : > { %v2091_v19 = vadd.f32 %v1047_v1, %v791_v14  ;;  %890 = vst [vmem:[#allocation2 + $0x18] sm:$0xff] (!%p1048_p0), %v874_v30 }
 0x26b   : > { %v2093_v21 = vadd.f32 %v1047_v1, %v786_v16  ;;  %v1307_v24 = vpop.f32.mrb[22].mxu0  ;;  %889 = vst [vmem:[#allocation2 + $0x10] sm:$0xff] (!%p1048_p0), %v873_v29 }
 0x26c   : > { %v801_v25 = vadd.f32 %v1307_v24, %v1251_v58  ;;  %v795_v28 = vpop.f32.mrb[23].mxu0  ;;  %v876_v41 = vmax.f32 (!%p1048_p0), %v2091_v19, 0.0 }
 0x26d   : > { %v796_v31 = vadd.f32 %v795_v28, %v650_v60  ;;  %v875_v40 = vmax.f32 (!%p1048_p0), %v2093_v21, 0.0 }
 0x26e   : > { %v858_v32 = vadd.f32 %v1047_v1, %v801_v25  ;;  %892 = vst [vmem:[#allocation2 + $0x28] sm:$0xff] (!%p1048_p0), %v876_v41 }
 0x26f   : > { %v857_v33 = vadd.f32 %v1047_v1, %v796_v31  ;;  %v1310_v34 = vpop.f32.mrb[8].mxu1  ;;  %891 = vst [vmem:[#allocation2 + $0x20] sm:$0xff] (!%p1048_p0), %v875_v40 }
 0x270   : > { %v860_v35 = vadd.f32 %v1310_v34, %v1047_v1  ;;  %v805_v36 = vpop.f32.mrb[9].mxu1  ;;  %v878_v47 = vmax.f32 (!%p1048_p0), %v858_v32, 0.0 }
 0x271   : > { %v859_v37 = vadd.f32 %v1047_v1, %v805_v36  ;;  %v877_v46 = vmax.f32 (!%p1048_p0), %v857_v33, 0.0 }
 0x272   : > { %v880_v50 = vmax.f32 (!%p1048_p0), %v860_v35, 0.0  ;;  %894 = vst [vmem:[#allocation2 + $0x38] sm:$0xff] (!%p1048_p0), %v878_v47 }
 0x273   : > { %v1313_v38 = vpop.f32.mrb[10].mxu1  ;;  %v879_v49 = vmax.f32 (!%p1048_p0), %v859_v37, 0.0  ;;  %893 = vst [vmem:[#allocation2 + $0x30] sm:$0xff] (!%p1048_p0), %v877_v46 }
 0x274   : > { %v862_v39 = vadd.f32 %v1313_v38, %v1047_v1  ;;  %v815_v17 = vpop.f32.mrb[11].mxu1  ;;  %896 = vst [vmem:[#allocation2 + $0x48] sm:$0xff] (!%p1048_p0), %v880_v50 }
 0x275   : > { %v861_v42 = vadd.f32 %v1047_v1, %v815_v17  ;;  %895 = vst [vmem:[#allocation2 + $0x40] sm:$0xff] (!%p1048_p0), %v879_v49 }
 0x276   : > { %v882_v52 = vmax.f32 (!%p1048_p0), %v862_v39, 0.0 }
 0x277   : > { %v1316_v43 = vpop.f32.mrb[12].mxu1  ;;  %870 = sbr.rel (%p1048_p0) target bundleno = 642 (0x282), region = 64  ;;  %v881_v51 = vmax.f32 (!%p1048_p0), %v861_v42, 0.0 }
 0x278   : > { %v864_v18 = vadd.f32 %v1316_v43, %v1047_v1  ;;  %v825_v44 = vpop.f32.mrb[13].mxu1  ;;  %898 = vst [vmem:[#allocation2 + $0x58] sm:$0xff] (!%p1048_p0), %v882_v52 }
 0x279   : > { %v863_v20 = vadd.f32 %v1047_v1, %v825_v44  ;;  %897 = vst [vmem:[#allocation2 + $0x50] sm:$0xff] (!%p1048_p0), %v881_v51 }
 0x27a   : > { %v884_v54 = vmax.f32 (!%p1048_p0), %v864_v18, 0.0 }
 0x27b   : > { %v1319_v45 = vpop.f32.mrb[14].mxu1  ;;  %v883_v53 = vmax.f32 (!%p1048_p0), %v863_v20, 0.0 }
 0x27c   : > { %v866_v48 = vadd.f32 %v1319_v45, %v1047_v1  ;;  %v835_v22 = vpop.f32.mrb[15].mxu1  ;;  %900 = vst [vmem:[#allocation2 + $0x68] sm:$0xff] (!%p1048_p0), %v884_v54 }
 0x27d   : > { %v865_v23 = vadd.f32 %v1047_v1, %v835_v22  ;;  %899 = vst [vmem:[#allocation2 + $0x60] sm:$0xff] (!%p1048_p0), %v883_v53 }
 0x27e   : > { %v886_v56 = vmax.f32 %v866_v48, 0.0 }
 0x27f   : > { %v885_v55 = vmax.f32 %v865_v23, 0.0 }
 0x280   : > { %902 = vst [vmem:[#allocation2 + $0x78] sm:$0xff] %v886_v56 }
 0x281   : > { %901 = vst [vmem:[#allocation2 + $0x70] sm:$0xff] %v885_v55 }
 0x282 PF: > { %p1049_p8 = scmp.ne.s32.totalorder %s1772_s22, 1 }
 0x283   : > { %907 = vst [vmem:[#allocation10] sm:$0xff] (!%p1049_p8), %v2085_v6  ;;  %908 = vst [vmem:[#allocation10 + $0x8] sm:$0xff] (!%p1049_p8), %v2083_v5 }
 0x284   : > { %906 = sbr.rel (%p1049_p8) target bundleno = 651 (0x28b), region = 68  ;;  %909 = vst [vmem:[#allocation10 + $0x10] sm:$0xff] (!%p1049_p8), %v2089_v12  ;;  %910 = vst [vmem:[#allocation10 + $0x18] sm:$0xff] (!%p1049_p8), %v2087_v11 }
 0x285   : > { %911 = vst [vmem:[#allocation10 + $0x20] sm:$0xff] (!%p1049_p8), %v2093_v21  ;;  %912 = vst [vmem:[#allocation10 + $0x28] sm:$0xff] (!%p1049_p8), %v2091_v19 }
 0x286   : > { %913 = vst [vmem:[#allocation10 + $0x30] sm:$0xff] (!%p1049_p8), %v857_v33  ;;  %914 = vst [vmem:[#allocation10 + $0x38] sm:$0xff] (!%p1049_p8), %v858_v32 }
 0x287   : > { %915 = vst [vmem:[#allocation10 + $0x40] sm:$0xff] (!%p1049_p8), %v859_v37  ;;  %916 = vst [vmem:[#allocation10 + $0x48] sm:$0xff] (!%p1049_p8), %v860_v35 }
 0x288   : > { %917 = vst [vmem:[#allocation10 + $0x50] sm:$0xff] (!%p1049_p8), %v861_v42  ;;  %918 = vst [vmem:[#allocation10 + $0x58] sm:$0xff] (!%p1049_p8), %v862_v39 }
 0x289   : > { %919 = vst [vmem:[#allocation10 + $0x60] sm:$0xff] (!%p1049_p8), %v863_v20  ;;  %920 = vst [vmem:[#allocation10 + $0x68] sm:$0xff] (!%p1049_p8), %v864_v18 }
 0x28a   : > { %921 = vst [vmem:[#allocation10 + $0x70] sm:$0xff] (!%p1049_p8), %v865_v23  ;;  %922 = vst [vmem:[#allocation10 + $0x78] sm:$0xff] (!%p1049_p8), %v866_v48 }
 0x28b PF: > { %s1720_s6 = smov [#allocation10]  }
 0x28c   : > { %s929_s30 = sshll.u32 %s1720_s6, 4  ;;  %s930_s30 = int_to_ptr.vmem [resolvable:$true] %s929_s30 }
 0x28d   : > { %s1640_s15 = scalar_lea.vmem %s930_s30, 2048  ;;  %p1647_p11 = scmp.lt.s32.totalorder %s930_s30, %s930_s30 }
 0x28e   : > { %p1641_p2 = scmp.ne.s32.totalorder %s930_s30, %s1640_s15  ;;  %p1648_p12 = scmp.lt.s32.totalorder %s1640_s15, %s1640_s15 }
 0x290   : > { %p1642_p4 = pnand %p1641_p2, %p1048_p0  ;;  %p1649_p13 = por %p1648_p12, %p1647_p11 }
 0x292   : > { %p1643_p7 = pneg %p1642_p4 }
 0x294   : > { %p1650_p5 = pnand %p1649_p13, %p1643_p7 }
 0x296   : > { %1653 = shalt.err (!%p1650_p5)
}
 0x297   : > { %s1654_s12 = scalar_lea.hbm %s2151_s5, 2048 }
 0x298   : > { %p1655_p10 = scmp.ne.s32.totalorder %s2151_s5, %s1654_s12  ;;  %p1660_p3 = scmp.lt.u32.totalorder %s1654_s12, %s2151_s5 }
 0x29a   : > { %p1656_p1 = pnand %p1655_p10, %p1048_p0 }
 0x29c   : > { %p1657_p9 = pneg %p1656_p1 }
 0x29e   : > { %p1662_p6 = pnand %p1660_p3, %p1657_p9 }
 0x2a0   : > { %1665 = shalt.err (!%p1662_p6)
}
 0x2a1   : > { %s1721_s25 = smov 128   ;;  %s1722_s29 = smov 8  }
 0x2a2   : > { %1461 = dma.vmem_to_hbm [thread:$0]  (%p1048_p0), %s930_s30, 2048, %s2151_s5, [#allocation5], %s1721_s25, %s1721_s25, %s1722_s29  }
 0x2a3   : > { %1695 = dma.done.wait (%p1048_p0), [#allocation5], 2048  }
 0x2a4   : > { %1697 = vsyncadd (%p1048_p0), [#allocation5], 4294965248 }
 0x2a5 PF: > { %p15_p8 = scmp.ge.s32.totalorder %s1775_s23, 4   ;;  %s2179_s18 = smov %s1704_s19 }
 0x2a6   : > { %s2180_s19 = smov %s1708_s20  ;;  %s2181_s20 = smov %s1785_s26 }
 0x2a7   : > { %s2182_s21 = smov %s1775_s23  ;;  %17 = sbr.rel (!%p15_p8) target bundleno = 4 (0x4), region = 110 }
 0x2ae   :  { %945 = vsyncpa [#allocation4], 1 }
 0x2af   :  { %947 = vsyncpa [#allocation4 + $0x1], 1 }
 0x2b0   :  { %948 = vsyncpa [#allocation7], 1 }
 0x2b1   :  { %949 = vsyncpa [#allocation5], 1 }
 0x2b2   :  { %951 = vsyncpa [#allocation5 + $0x1], 1 }

</bundles_post_ra>
